<compile_context>
chip_gen: v5e
topology: v5e:2x2
jax: 0.10.0
libtpu: 0.0.40
codegen_flags: <defaults>
</compile_context>

<pallas_src>
import functools

import jax
import jax.numpy as jnp
from jax.experimental import pallas as pl
from jax.experimental.pallas import tpu as pltpu


def _rbf_tile_kernel(coef_ref, xr_ref, xct_ref, nr_ref, nc_ref, out_ref, *,
                     n_kernels, use_squaring):
    # MXU: canonical (T,D) @ (D,T) contraction, no in-kernel transpose.
    gram = jnp.dot(xr_ref[...], xct_ref[...],
                   preferred_element_type=jnp.float32)          # (T, T)
    # Coefficients are pre-folded into xr / nr / nc in the wrapper, so this is
    # just two broadcast adds per element.
    arg = gram + nr_ref[...] + nc_ref[...]                      # (T,1)+(1,T) bcast

    if use_squaring:
        # mul_factor == 2: arg == coef_min * l2 <= 0 (coef_min < 0).  One EUP
        # exp, then repeated squaring on idle VALU slots covers all kernels:
        # exp(c*l2)^2 = exp(2c*l2).
        arg = jnp.minimum(arg, 0.0)                              # clamp fp noise
        term = jnp.exp(arg)
        acc = term
        for _ in range(n_kernels - 1):                           # static unroll
            term = term * term
            acc = acc + term
    else:
        # Generic path: arg == l2 (row operand pre-scaled by -2, norms by 1).
        l2 = jnp.maximum(arg, 0.0)
        acc = jnp.exp(l2 * coef_ref[0])
        for k in range(1, n_kernels):
            acc = acc + jnp.exp(l2 * coef_ref[k])

    out_ref[...] = acc.astype(out_ref.dtype)


def _round_up(a, b):
    return (a + b - 1) // b * b


def _pick_tile(n, d, in_bytes):
    """Largest tile in {128,256,512,1024} that (a) fits a ~40 MiB VMEM budget
    with double-buffered blocks and (b) keeps >=2 tiles per axis when N spans
    more than one tile (so both v7x TensorCores get work)."""
    n_pad = _round_up(max(n, 1), 128)
    budget = 40 << 20
    best = 128
    for t in (256, 512, 1024):
        if t > n_pad:
            break
        est = _vmem_estimate(t, d, in_bytes)
        if est > budget:
            break
        if pl.cdiv(n, t) < 2 and n > 256:
            break
        best = t
    return best


def _vmem_estimate(t, d, in_bytes):
    # double-buffered xr + xcT blocks, double-buffered output, ~3 live f32
    # (T,T) temporaries, double-buffered norm blocks.
    return (2 * 2 * t * d * in_bytes) + (2 + 3) * t * t * 4 + 2 * 2 * t * 4


def rbf_forward(x, *, n_kernels=5, mul_factor=2.0, bandwidth=None,
                out_dtype=jnp.float32):
    """Pallas equivalent of RBF.forward for X of shape (N, D)."""
    N, D = x.shape
    x32 = x.astype(jnp.float32)

    # bandwidth_multipliers = mul_factor ** (arange(n_kernels) - n_kernels // 2)
    multipliers = (mul_factor ** (jnp.arange(n_kernels) - n_kernels // 2)
                   ).astype(jnp.float32)

    # Mean off-diagonal squared distance, computed cancellation-free by
    # centering:  sum_{i,j}||x_i - x_j||^2 = 2*N*sum_i||x_i - mean||^2.
    if bandwidth is None:
        mu = jnp.mean(x32, axis=0, keepdims=True)
        xc0 = x32 - mu
        total = 2.0 * jnp.float32(N) * jnp.sum(xc0 * xc0)
        bw = total / jnp.float32(N * N - N)
    else:
        bw = jnp.asarray(bandwidth, jnp.float32)

    # c_k = -1 / (bw * mult_k);  hot loop is exp(arg) only.
    coef = (-1.0 / (bw * multipliers)).astype(jnp.float32)

    # Squaring trick only when mul_factor is the static default 2.0 (traced
    # mul_factor falls back to the generic path) and n_kernels is modest
    # (underflow of the base term amplifies ~2^(n_kernels-1)).
    use_squaring = (isinstance(mul_factor, (int, float))
                    and float(mul_factor) == 2.0 and n_kernels <= 8)

    # bf16 gram operands when D is large: MXU-native rate, half the DMA/VMEM.
    use_bf16_gram = D >= 256
    in_dtype = jnp.bfloat16 if use_bf16_gram else jnp.float32
    in_bytes = 2 if use_bf16_gram else 4

    T = _pick_tile(N, D, in_bytes)
    grid_n = pl.cdiv(N, T)
    Np = grid_n * T                       # row-pad X so input blocks are in-bounds

    # Fold coefficients into O(N*D)/O(N) wrapper work.
    sq = jnp.sum(x32 * x32, axis=-1)                      # (N,) row norms
    if use_squaring:
        c_min = coef[n_kernels - 1]                       # smallest |coef| (<0)
        row_scale = -2.0 * c_min
        norm_scale = c_min
    else:
        row_scale = jnp.float32(-2.0)
        norm_scale = jnp.float32(1.0)

    x_row = (x32 * row_scale).astype(in_dtype)            # (N, D) scaled rows
    x_colT = x32.astype(in_dtype).T                       # (D, N) canonical RHS
    pad = Np - N
    if pad:
        x_row = jnp.pad(x_row, ((0, pad), (0, 0)))
        x_colT = jnp.pad(x_colT, ((0, 0), (0, pad)))
        sq = jnp.pad(sq, (0, pad))
    nr = (norm_scale * sq)[:, None]                       # (Np, 1)
    nc = (norm_scale * sq)[None, :]                       # (1, Np)

    est = _vmem_estimate(T, D, in_bytes)
    vmem_limit = int(min(64 << 20, max(32 << 20, est * 3 // 2)))

    kernel = functools.partial(_rbf_tile_kernel, n_kernels=n_kernels,
                               use_squaring=use_squaring)

    out = pl.pallas_call(
        kernel,
        out_shape=jax.ShapeDtypeStruct((N, N), out_dtype),
        grid=(grid_n, grid_n),
        in_specs=[
            pl.BlockSpec(memory_space=pltpu.MemorySpace.SMEM),   # coef (scalars)
            pl.BlockSpec((T, D), lambda i, j: (i, 0)),           # scaled row block
            pl.BlockSpec((D, T), lambda i, j: (0, j)),           # X^T column block
            pl.BlockSpec((T, 1), lambda i, j: (i, 0)),           # coef * ||x_i||^2
            pl.BlockSpec((1, T), lambda i, j: (0, j)),           # coef * ||x_j||^2
        ],
        out_specs=pl.BlockSpec((T, T), lambda i, j: (i, j)),     # masked edge tiles
        compiler_params=pltpu.CompilerParams(
            dimension_semantics=("parallel", "parallel"),
            vmem_limit_bytes=vmem_limit),
    )(coef, x_row, x_colT, nr, nc)

    return out


def _rbf_reference(x, *, n_kernels=5, mul_factor=2.0, bandwidth=None):
    x = x.astype(jnp.float32)
    mult = (mul_factor ** (jnp.arange(n_kernels) - n_kernels // 2)
            ).astype(jnp.float32)
    d = x[:, None, :] - x[None, :, :]
    l2 = jnp.sum(d * d, axis=-1)
    n = x.shape[0]
    bw = jnp.sum(l2) / (n * n - n) if bandwidth is None else jnp.float32(bandwidth)
    return jnp.sum(jnp.exp(-l2[None, ...] / (bw * mult)[:, None, None]), axis=0)


if __name__ == "__main__":
    key = jax.random.PRNGKey(0)

    # 1) Small case (spec-sized): default params, f32 gram path.
    N, D = 16, 32
    x = jax.random.normal(key, (N, D), dtype=jnp.float32)
    out = jax.block_until_ready(rbf_forward(x))
    ref = _rbf_reference(x)
    assert out.shape == (N, N)
    assert jnp.allclose(out, ref, atol=1e-4, rtol=1e-4), \
        f"max abs err {jnp.max(jnp.abs(out - ref))}"

    # 2) Unaligned N (exercises masked edge-tile stores, no output padding).
    k2 = jax.random.PRNGKey(1)
    xu = jax.random.normal(k2, (200, 32), dtype=jnp.float32) + 3.0  # nonzero mean
    out_u = jax.block_until_ready(rbf_forward(xu))
    ref_u = _rbf_reference(xu)
    assert jnp.allclose(out_u, ref_u, atol=1e-3, rtol=1e-3), \
        f"max abs err {jnp.max(jnp.abs(out_u - ref_u))}"

    # 3) Explicit-bandwidth / generic-mul_factor path.
    out2 = jax.block_until_ready(
        rbf_forward(x, n_kernels=3, mul_factor=3.0, bandwidth=1.5))
    ref2 = _rbf_reference(x, n_kernels=3, mul_factor=3.0, bandwidth=1.5)
    assert jnp.allclose(out2, ref2, atol=1e-4, rtol=1e-4), \
        f"max abs err {jnp.max(jnp.abs(out2 - ref2))}"

    # 4) Wide-feature case (bf16 gram operands, D >= 256).
    k3 = jax.random.PRNGKey(2)
    xw = jax.random.normal(k3, (136, 256), dtype=jnp.float32)
    out_w = jax.block_until_ready(rbf_forward(xw))
    ref_w = _rbf_reference(xw)
    assert jnp.allclose(out_w, ref_w, atol=5e-2, rtol=5e-2), \
        f"max abs err {jnp.max(jnp.abs(out_w - ref_w))}"

    print("KERNEL_OK")
</pallas_src>

<mosaic_0001>
module attributes {stable_mosaic.version = 11 : i64} {
  func.func @_rbf_tile_kernel(%arg0: i32, %arg1: i32, %arg2: memref<5xf32, #tpu.memory_space<smem>>, %arg3: memref<128x32xf32, #tpu.memory_space<vmem>>, %arg4: memref<32x128xf32, #tpu.memory_space<vmem>>, %arg5: memref<128x1xf32, #tpu.memory_space<vmem>>, %arg6: memref<1x128xf32, #tpu.memory_space<vmem>>, %arg7: memref<128x128xf32, #tpu.memory_space<vmem>>) attributes {dimension_semantics = [#tpu.dimension_semantics<parallel>, #tpu.dimension_semantics<parallel>], iteration_bounds = array<i64: 1, 1>, scalar_prefetch = 0 : i64, scratch_operands = 0 : i64, tpu.core_type = #tpu.core_type<tc>, window_params = [{transform_indices = @transform_0, window_bounds = array<i64: 5>}, {transform_indices = @transform_1, window_bounds = array<i64: 128, 32>}, {transform_indices = @transform_2, window_bounds = array<i64: 32, 128>}, {transform_indices = @transform_3, window_bounds = array<i64: 128, 1>}, {transform_indices = @transform_4, window_bounds = array<i64: 1, 128>}, {transform_indices = @transform_5, window_bounds = array<i64: 128, 128>}]} {
    %c0 = arith.constant 0 : index
    %c0_0 = arith.constant 0 : index
    %0 = vector.load %arg3[%c0, %c0_0] : memref<128x32xf32, #tpu.memory_space<vmem>>, vector<128x32xf32>
    %c0_1 = arith.constant 0 : index
    %c0_2 = arith.constant 0 : index
    %1 = vector.load %arg4[%c0_1, %c0_2] : memref<32x128xf32, #tpu.memory_space<vmem>>, vector<32x128xf32>
    %cst = arith.constant dense<0.000000e+00> : vector<128x128xf32>
    %2 = tpu.matmul %0, %1, %cst {dimension_numbers = #tpu.dot_dimension_numbers<[1], [0], [0], [1], [0, 0, 1, 1], [], []>} : vector<128x32xf32>, vector<32x128xf32>, vector<128x128xf32> -> vector<128x128xf32>
    %c0_3 = arith.constant 0 : index
    %c0_4 = arith.constant 0 : index
    %3 = vector.load %arg5[%c0_3, %c0_4] : memref<128x1xf32, #tpu.memory_space<vmem>>, vector<128x1xf32>
    %4 = vector.broadcast %3 : vector<128x1xf32> to vector<128x128xf32>
    %5 = arith.addf %2, %4 : vector<128x128xf32>
    %c0_5 = arith.constant 0 : index
    %c0_6 = arith.constant 0 : index
    %6 = vector.load %arg6[%c0_5, %c0_6] : memref<1x128xf32, #tpu.memory_space<vmem>>, vector<1x128xf32>
    %7 = vector.broadcast %6 : vector<1x128xf32> to vector<128x128xf32>
    %8 = arith.addf %5, %7 : vector<128x128xf32>
    %cst_7 = arith.constant 0.000000e+00 : f32
    %9 = vector.broadcast %cst_7 : f32 to vector<128x128xf32>
    %10 = arith.minimumf %8, %9 : vector<128x128xf32>
    %11 = math.exp %10 : vector<128x128xf32>
    %12 = arith.mulf %11, %11 : vector<128x128xf32>
    %13 = arith.addf %11, %12 : vector<128x128xf32>
    %14 = arith.mulf %12, %12 : vector<128x128xf32>
    %15 = arith.addf %13, %14 : vector<128x128xf32>
    %16 = arith.mulf %14, %14 : vector<128x128xf32>
    %17 = arith.addf %15, %16 : vector<128x128xf32>
    %18 = arith.mulf %16, %16 : vector<128x128xf32>
    %19 = arith.addf %17, %18 : vector<128x128xf32>
    %c0_8 = arith.constant 0 : index
    %c0_9 = arith.constant 0 : index
    %20 = vector.load %arg7[%c0_8, %c0_9] : memref<128x128xf32, #tpu.memory_space<vmem>>, vector<128x128xf32>
    tpu.vector_store %arg7[%c0_8, %c0_9], %19 {strides = array<i32>} : memref<128x128xf32, #tpu.memory_space<vmem>>, vector<128x128xf32>,
    return
  }
  func.func @transform_0(%arg0: i32, %arg1: i32) -> i32 {
    %c0_i32 = arith.constant 0 : i32
    %c0_i32_0 = arith.constant 0 : i32
    return %c0_i32 : i32
  }
  func.func @transform_1(%arg0: i32, %arg1: i32) -> (i32, i32) {
    %c0_i32 = arith.constant 0 : i32
    %c0_i32_0 = arith.constant 0 : i32
    return %arg0, %c0_i32 : i32, i32
  }
  func.func @transform_2(%arg0: i32, %arg1: i32) -> (i32, i32) {
    %c0_i32 = arith.constant 0 : i32
    %c0_i32_0 = arith.constant 0 : i32
    return %c0_i32, %arg1 : i32, i32
  }
  func.func @transform_3(%arg0: i32, %arg1: i32) -> (i32, i32) {
    %c0_i32 = arith.constant 0 : i32
    %c0_i32_0 = arith.constant 0 : i32
    return %arg0, %c0_i32 : i32, i32
  }
  func.func @transform_4(%arg0: i32, %arg1: i32) -> (i32, i32) {
    %c0_i32 = arith.constant 0 : i32
    %c0_i32_0 = arith.constant 0 : i32
    return %c0_i32, %arg1 : i32, i32
  }
  func.func @transform_5(%arg0: i32, %arg1: i32) -> (i32, i32) {
    %c0_i32 = arith.constant 0 : i32
    return %arg0, %arg1 : i32, i32
  }
}

</mosaic_0001>

<bundles_post_ra>
// kernel: tpu_custom_call.1
= control target key start
LH: loop header
LB: loop body
LE: loop exit
PB: predicated region body
PF: predicated region fallthrough
CT: control target
= control target key end

     0   :  { %10 = vsyncpa [#allocation4], 0  ;;  %s808_s0 = inlined_call_operand.vmem [shape: f32[5], index: 0, kind: input, shape index: {}]   ;;  %s809_s1 = inlined_call_operand.vmem [shape: f32[128,32], index: 1, kind: input, shape index: {}]   ;;  %s810_s2 = inlined_call_operand.vmem [shape: f32[32,128], index: 2, kind: input, shape index: {}]   ;;  %s811_s3 = inlined_call_operand.vmem [shape: f32[128,1], index: 3, kind: input, shape index: {}]   ;;  %s812_s4 = inlined_call_operand.vmem [shape: f32[1,128], index: 4, kind: input, shape index: {}]   ;;  %s813_s5 = inlined_call_operand.hbm [shape: f32[16,16], index: 5, kind: output, shape index: {}]  }
   0x1   :  { %11 = vsyncpa [#allocation3], 0  ;;  %s17_s20 = sshll.u32 %s808_s0, 4  ;;  %s604_s21 = smov [#allocation2]   ;;  %s18_s20 = int_to_ptr.vmem [resolvable:$true] %s17_s20 }
   0x2   :  { %20 = dma.vmem_to_smem %s18_s20, 16, %s604_s21, [#allocation4]  }
   0x3   :  { %600 = dma.done.wait [#allocation4], 16  }
   0x4   :  { %601 = vsyncadd [#allocation4], 4294967280 }
   0x5   :  { %33 = sfence }
   0x6   :  { %v53_v0 = vld [vmem:[%s810_s2 + $0x18] sm:$0xff]  ;;  %v605_v1 = vmov 0   ;;  %v56_v2 = vld [vmem:[%s811_s3 + $0x10] sm:$0xff]  ;;  %v54_v3 = vld [vmem:[%s811_s3] sm:$0xff]  ;;  %vm150_vm0 = vcmask 261120  }
   0x7   :  { %529 = vset.pattern.permute.xlu1 %v605_v1  ;;  %528 = vset.pattern.permute.xlu0 %v605_v1  ;;  %v52_v4 = vld [vmem:[%s810_s2 + $0x10] sm:$0xff]  ;;  %v51_v5 = vld [vmem:[%s810_s2 + $0x8] sm:$0xff]  ;;  %v50_v6 = vld [vmem:[%s810_s2] sm:$0xff] }
   0x8   :  { %211 = vmatpush.msra.mxu0 %v53_v0  ;;  %511 = vmatpush.msra.mxu1 %v53_v0  ;;  %v34_v7 = vld [vmem:[%s809_s1] sm:$0xff]  ;;  %v57_v12 = vld [vmem:[%s811_s3 + $0x18] sm:$0xff]  ;;  %v55_v13 = vld [vmem:[%s811_s3 + $0x8] sm:$0xff] }
   0x9   :  { %512 = vmatpush.msra.mxu2 %v53_v0  ;;  %513 = vmatpush.msra.mxu3 %v53_v0  ;;  %v38_v8 = vld [vmem:[%s809_s1 + $0x20] sm:$0xff]  ;;  %v35_v14 = vld [vmem:[%s809_s1 + $0x8] sm:$0xff]  ;;  %v61_v19 = vld [vmem:[%s811_s3 + $0x38] sm:$0xff] }
   0xa   :  { %82 = vperm.xlu1 %529, %v56_v2   ;;  %72 = vperm.xlu0 %528, %v54_v3   ;;  %v42_v9 = vld [vmem:[%s809_s1 + $0x40] sm:$0xff]  ;;  %v39_v15 = vld [vmem:[%s809_s1 + $0x28] sm:$0xff]  ;;  %v60_v20 = vld [vmem:[%s811_s3 + $0x30] sm:$0xff] }
   0xb   :  { %212 = vmatpush.msra.mxu0 %v52_v4  ;;  %514 = vmatpush.msra.mxu1 %v52_v4  ;;  %v46_v10 = vld [vmem:[%s809_s1 + $0x60] sm:$0xff]  ;;  %v43_v16 = vld [vmem:[%s809_s1 + $0x48] sm:$0xff]  ;;  %v36_v21 = vld [vmem:[%s809_s1 + $0x10] sm:$0xff] }
   0xc   :  { %515 = vmatpush.msra.mxu2 %v52_v4  ;;  %516 = vmatpush.msra.mxu3 %v52_v4  ;;  %v58_v11 = vld [vmem:[%s811_s3 + $0x20] sm:$0xff]  ;;  %v47_v17 = vld [vmem:[%s809_s1 + $0x68] sm:$0xff]  ;;  %v40_v22 = vld [vmem:[%s809_s1 + $0x30] sm:$0xff] }
   0xd   :  { %213 = vmatpush.msra.mxu0 %v51_v5  ;;  %517 = vmatpush.msra.mxu1 %v51_v5  ;;  %v59_v18 = vld [vmem:[%s811_s3 + $0x28] sm:$0xff]  ;;  %v44_v23 = vld [vmem:[%s809_s1 + $0x50] sm:$0xff]  ;;  %v62_v25 = vld [vmem:[%s811_s3 + $0x40] sm:$0xff] }
   0xe   :  { %518 = vmatpush.msra.mxu2 %v51_v5  ;;  %519 = vmatpush.msra.mxu3 %v51_v5  ;;  %v48_v24 = vld [vmem:[%s809_s1 + $0x70] sm:$0xff]  ;;  %v63_v27 = vld [vmem:[%s811_s3 + $0x48] sm:$0xff]  ;;  %v37_v28 = vld [vmem:[%s809_s1 + $0x18] sm:$0xff] }
   0xf   :  { %214 = vmatpush.msra.mxu0 %v50_v6  ;;  %520 = vmatpush.msra.mxu1 %v50_v6  ;;  %v64_v26 = vld [vmem:[%s811_s3 + $0x50] sm:$0xff]  ;;  %v41_v29 = vld [vmem:[%s809_s1 + $0x38] sm:$0xff]  ;;  %v67_v33 = vld [vmem:[%s811_s3 + $0x68] sm:$0xff] }
  0x10   :  { %521 = vmatpush.msra.mxu2 %v50_v6  ;;  %522 = vmatpush.msra.mxu3 %v50_v6  ;;  %v45_v30 = vld [vmem:[%s809_s1 + $0x58] sm:$0xff]  ;;  %v66_v34 = vld [vmem:[%s811_s3 + $0x60] sm:$0xff]  ;;  %v68_v35 = vld [vmem:[%s811_s3 + $0x70] sm:$0xff] }
  0x11   :  { %530 = vset.pattern.permute.xlu2 %v605_v1  ;;  %495 = vmatmul.msk.f32.vlgmr.msra.gmra.mxu0 %vm150_vm0, %v34_v7  ;;  %v49_v31 = vld [vmem:[%s809_s1 + $0x78] sm:$0xff]  ;;  %v777_v45 = vld [vmem:[%s812_s4] ss:$0 sm:$0xff] }
  0x12   :  { %499 = vmatmul.msk.f32.vlgmr.msra.gmra.mxu1 %vm150_vm0, %v38_v8  ;;  %503 = vmatmul.msk.f32.vlgmr.msra.gmra.mxu2 %vm150_vm0, %v42_v9  ;;  %v65_v32 = vld [vmem:[%s811_s3 + $0x58] sm:$0xff] }
  0x13   :  { %507 = vmatmul.msk.f32.vlgmr.msra.gmra.mxu3 %vm150_vm0, %v46_v10  ;;  %92 = vperm.xlu2 %530, %v58_v11   ;;  %v69_v36 = vld [vmem:[%s811_s3 + $0x78] sm:$0xff] }
  0x14   :  { %87 = vperm.xlu1 %529, %v57_v12   ;;  %77 = vperm.xlu0 %528, %v55_v13  }
  0x19   :  { %496 = vmatmul.msk.f32.gmra.mxu0 %vm150_vm0, %v35_v14 }
  0x1a   :  { %500 = vmatmul.msk.f32.gmra.mxu1 %vm150_vm0, %v39_v15  ;;  %504 = vmatmul.msk.f32.gmra.mxu2 %vm150_vm0, %v43_v16 }
  0x1b   :  { %508 = vmatmul.msk.f32.gmra.mxu3 %vm150_vm0, %v47_v17  ;;  %97 = vperm.xlu2 %530, %v59_v18  }
  0x1c   :  { %107 = vperm.xlu1 %529, %v61_v19   ;;  %102 = vperm.xlu0 %528, %v60_v20  }
  0x21   :  { %497 = vmatmul.msk.f32.gmra.mxu0 %vm150_vm0, %v36_v21 }
  0x22   :  { %501 = vmatmul.msk.f32.gmra.mxu1 %vm150_vm0, %v40_v22  ;;  %505 = vmatmul.msk.f32.gmra.mxu2 %vm150_vm0, %v44_v23 }
  0x23   :  { %509 = vmatmul.msk.f32.gmra.mxu3 %vm150_vm0, %v48_v24  ;;  %112 = vperm.xlu2 %530, %v62_v25  }
  0x24   :  { %122 = vperm.xlu1 %529, %v64_v26   ;;  %117 = vperm.xlu0 %528, %v63_v27  }
  0x29   :  { %498 = vmatmul.msk.f32.gmra.mxu0 %vm150_vm0, %v37_v28 }
  0x2a   :  { %502 = vmatmul.msk.f32.gmra.mxu1 %vm150_vm0, %v41_v29  ;;  %506 = vmatmul.msk.f32.gmra.mxu2 %vm150_vm0, %v45_v30 }
  0x2b   :  { %510 = vmatmul.msk.f32.gmra.mxu3 %vm150_vm0, %v49_v31  ;;  %127 = vperm.xlu2 %530, %v65_v32  }
  0x2c   :  { %137 = vperm.xlu1 %529, %v67_v33   ;;  %132 = vperm.xlu0 %528, %v66_v34  }
  0x33   :  { %142 = vperm.xlu2 %530, %v68_v35  }
  0x34   :  { %147 = vperm.xlu0 %528, %v69_v36  }
  0x6d   :  { %v93_v39 = vpop.permute.xlu2 %92 }
  0x75   :  { %v98_v42 = vpop.permute.xlu2 %97 }
  0x7c   :  { %v766_v37 = vpop.permute.xlu1 %82  ;;  %v73_v38 = vpop.permute.xlu0 %72 }
  0x7d   :  { %v113_v54 = vpop.permute.xlu2 %112 }
  0x86   :  { %v768_v40 = vpop.permute.xlu1 %87  ;;  %v78_v41 = vpop.permute.xlu0 %77 }
  0x8e   :  { %v770_v43 = vpop.permute.xlu1 %107  ;;  %v772_v44 = vpop.permute.xlu0 %102 }
  0x8f   :  { %v216_v46 = vpop.f32.mrf.mxu0  ;;  %v228_v47 = vpop.f32.mrf.mxu1 }
  0x90   :  { %v217_v48 = vadd.f32 %v216_v46, %v73_v38  ;;  %v229_v49 = vadd.f32 %v228_v47, %v93_v39 }
  0x92   :  { %v268_v50 = vadd.f32 %v777_v45, %v217_v48  ;;  %v272_v51 = vadd.f32 %v777_v45, %v229_v49 }
  0x94   :  { %v284_v52 = vmin.f32 %v268_v50, 0.0  ;;  %v288_v53 = vmin.f32 %v272_v51, 0.0 }
  0x95   :  { %v240_v55 = vpop.f32.mrf.mxu2 }
  0x96   :  { %v300_v56 = vmul.f32 1.442695, %v284_v52  ;;  %v308_v57 = vmul.f32 1.442695, %v288_v53  ;;  %v241_v58 = vadd.f32 %v240_v55, %v113_v54  ;;  %v252_v59 = vpop.f32.mrf.mxu3  ;;  %v781_v60 = vpop.permute.xlu1 %122 }
  0x97   :  { %v118_v61 = vpop.permute.xlu0 %117  ;;  %v219_v62 = vpop.f32.mrf.mxu0 }
  0x98   :  { %532 = vpow2.f32 %v300_v56  ;;  %v276_v63 = vadd.f32 %v777_v45, %v241_v58  ;;  %v220_v0 = vadd.f32 %v219_v62, %v78_v41  ;;  %v231_v1 = vpop.f32.mrf.mxu1 }
  0x99   :  { %534 = vpow2.f32 %v308_v57  ;;  %v232_v2 = vadd.f32 %v231_v1, %v98_v42  ;;  %v790_v42 = vpop.permute.xlu2 %127 }
  0x9a   :  { %v292_v3 = vmin.f32 %v276_v63, 0.0  ;;  %v269_v4 = vadd.f32 %v777_v45, %v220_v0 }
  0x9b   :  { %v273_v5 = vadd.f32 %v777_v45, %v232_v2 }
  0x9c   :  { %v316_v6 = vmul.f32 1.442695, %v292_v3  ;;  %v285_v7 = vmin.f32 %v269_v4, 0.0 }
  0x9d   :  { %v289_v8 = vmin.f32 %v273_v5, 0.0  ;;  %v243_v9 = vpop.f32.mrf.mxu2 }
  0x9e   :  { %v533_v10 = vpop.eup %532  ;;  %536 = vpow2.f32 %v316_v6  ;;  %v302_v11 = vmul.f32 1.442695, %v285_v7  ;;  %v244_v12 = vadd.f32 %v243_v9, %v118_v61  ;;  %v255_v13 = vpop.f32.mrf.mxu3 }
  0x9f   :  { %v138_v14 = vpop.permute.xlu1 %137  ;;  %v535_v15 = vpop.eup %534  ;;  %v332_v16 = vmul.f32 %v533_v10, %v533_v10  ;;  %v310_v17 = vmul.f32 1.442695, %v289_v8 }
  0xa0   :  { %v256_v18 = vadd.f32 %v255_v13, %v138_v14  ;;  %v133_v19 = vpop.permute.xlu0 %132  ;;  %v336_v20 = vmul.f32 %v535_v15, %v535_v15  ;;  %538 = vpow2.f32 %v302_v11  ;;  %v277_v21 = vadd.f32 %v777_v45, %v244_v12  ;;  %v222_v23 = vpop.f32.mrf.mxu0 }
  0xa1   :  { %v253_v22 = vadd.f32 %v252_v59, %v133_v19  ;;  %v348_v24 = vadd.f32 %v533_v10, %v332_v16  ;;  %v364_v25 = vmul.f32 %v332_v16, %v332_v16  ;;  %540 = vpow2.f32 %v310_v17  ;;  %v234_v2 = vpop.f32.mrf.mxu1 }
  0xa2   :  { %v281_v26 = vadd.f32 %v777_v45, %v256_v18  ;;  %v352_v27 = vadd.f32 %v535_v15, %v336_v20  ;;  %v368_v28 = vmul.f32 %v336_v20, %v336_v20  ;;  %v293_v29 = vmin.f32 %v277_v21, 0.0 }
  0xa3   :  { %v280_v30 = vadd.f32 %v777_v45, %v253_v22  ;;  %v380_v31 = vadd.f32 %v364_v25, %v348_v24  ;;  %v396_v32 = vmul.f32 %v364_v25, %v364_v25  ;;  %v223_v34 = vadd.f32 %v222_v23, %v766_v37  ;;  %v143_v25 = vpop.permute.xlu2 %142 }
  0xa4   :  { %v297_v33 = vmin.f32 %v281_v26, 0.0  ;;  %v537_v35 = vpop.eup %536  ;;  %v384_v36 = vadd.f32 %v368_v28, %v352_v27  ;;  %v400_v38 = vmul.f32 %v368_v28, %v368_v28  ;;  %v318_v39 = vmul.f32 1.442695, %v293_v29 }
  0xa5   :  { %v296_v41 = vmin.f32 %v280_v30, 0.0  ;;  %v412_v46 = vadd.f32 %v396_v32, %v380_v31  ;;  %v428_v47 = vmul.f32 %v396_v32, %v396_v32  ;;  %v340_v48 = vmul.f32 %v537_v35, %v537_v35  ;;  %v246_v19 = vpop.f32.mrf.mxu2 }
  0xa6   :  { %v326_v49 = vmul.f32 1.442695, %v297_v33  ;;  %v539_v50 = vpop.eup %538  ;;  %v416_v51 = vadd.f32 %v400_v38, %v384_v36  ;;  %v432_v52 = vmul.f32 %v400_v38, %v400_v38  ;;  %542 = vpow2.f32 %v318_v39  ;;  %v258_v20 = vpop.f32.mrf.mxu3 }
  0xa7   :  { %v324_v53 = vmul.f32 1.442695, %v296_v41  ;;  %v541_v54 = vpop.eup %540  ;;  %v444_v55 = vadd.f32 %v428_v47, %v412_v46  ;;  %v356_v56 = vadd.f32 %v537_v35, %v340_v48  ;;  %v372_v37 = vmul.f32 %v340_v48, %v340_v48 }
  0xa8   :  { %v333_v57 = vmul.f32 %v539_v50, %v539_v50  ;;  %v448_v58 = vadd.f32 %v432_v52, %v416_v51  ;;  %v337_v59 = vmul.f32 %v541_v54, %v541_v54  ;;  %544 = vpow2.f32 %v326_v49 }
  0xa9   :  { %v270_v61 = vadd.f32 %v777_v45, %v223_v34  ;;  %460 = vst [vmem:[#allocation5] sm:$0xff] %v444_v55  ;;  %v388_v62 = vadd.f32 %v372_v37, %v356_v56  ;;  %v404_v63 = vmul.f32 %v372_v37, %v372_v37  ;;  %546 = vpow2.f32 %v324_v53  ;;  %v225_v55 = vpop.f32.mrf.mxu0 }
  0xaa   :  { %v349_v0 = vadd.f32 %v539_v50, %v333_v57  ;;  %v365_v1 = vmul.f32 %v333_v57, %v333_v57  ;;  %464 = vst [vmem:[#allocation5 + $0x20] sm:$0xff] %v448_v58  ;;  %v353_v3 = vadd.f32 %v541_v54, %v337_v59  ;;  %v369_v4 = vmul.f32 %v337_v59, %v337_v59 }
  0xab   :  { %v286_v5 = vmin.f32 %v270_v61, 0.0  ;;  %v420_v6 = vadd.f32 %v404_v63, %v388_v62  ;;  %v436_v7 = vmul.f32 %v404_v63, %v404_v63  ;;  %v235_v14 = vadd.f32 %v234_v2, %v772_v44 }
  0xac   :  { %v381_v8 = vadd.f32 %v365_v1, %v349_v0  ;;  %v397_v9 = vmul.f32 %v365_v1, %v365_v1  ;;  %v543_v10 = vpop.eup %542  ;;  %v385_v11 = vadd.f32 %v369_v4, %v353_v3  ;;  %v401_v12 = vmul.f32 %v369_v4, %v369_v4  ;;  %v237_v0 = vpop.f32.mrf.mxu1 }
  0xad   :  { %v304_v13 = vmul.f32 1.442695, %v286_v5  ;;  %v452_v15 = vadd.f32 %v436_v7, %v420_v6  ;;  %v341_v18 = vmul.f32 %v543_v10, %v543_v10  ;;  %v274_v24 = vadd.f32 %v777_v45, %v235_v14  ;;  %v249_v5 = vpop.f32.mrf.mxu2 }
  0xae   :  { %v413_v16 = vadd.f32 %v397_v9, %v381_v8  ;;  %v429_v17 = vmul.f32 %v397_v9, %v397_v9  ;;  %v545_v21 = vpop.eup %544  ;;  %v417_v22 = vadd.f32 %v401_v12, %v385_v11  ;;  %v433_v23 = vmul.f32 %v401_v12, %v401_v12  ;;  %v261_v6 = vpop.f32.mrf.mxu3 }
  0xaf   :  { %548 = vpow2.f32 %v304_v13  ;;  %468 = vst [vmem:[#allocation5 + $0x40] sm:$0xff] %v452_v15  ;;  %v357_v27 = vadd.f32 %v543_v10, %v341_v18  ;;  %v373_v28 = vmul.f32 %v341_v18, %v341_v18  ;;  %v345_v29 = vmul.f32 %v545_v21, %v545_v21  ;;  %v547_v30 = vpop.eup %546  ;;  %v148_v12 = vpop.permute.xlu0 %147 }
  0xb0   :  { %v445_v26 = vadd.f32 %v429_v17, %v413_v16  ;;  %v449_v44 = vadd.f32 %v433_v23, %v417_v22  ;;  %v290_v31 = vmin.f32 %v274_v24, 0.0  ;;  %v247_v32 = vadd.f32 %v246_v19, %v781_v60 }
  0xb1   :  { %v259_v33 = vadd.f32 %v258_v20, %v143_v25  ;;  %v389_v34 = vadd.f32 %v373_v28, %v357_v27  ;;  %v405_v35 = vmul.f32 %v373_v28, %v373_v28  ;;  %v361_v36 = vadd.f32 %v545_v21, %v345_v29 }
  0xb2   :  { %461 = vst [vmem:[#allocation5 + $0x8] sm:$0xff] %v445_v26  ;;  %v377_v38 = vmul.f32 %v345_v29, %v345_v29  ;;  %v344_v39 = vmul.f32 %v547_v30, %v547_v30  ;;  %v312_v41 = vmul.f32 1.442695, %v290_v31  ;;  %v278_v46 = vadd.f32 %v777_v45, %v247_v32 }
  0xb3   :  { %465 = vst [vmem:[#allocation5 + $0x28] sm:$0xff] %v449_v44  ;;  %v282_v47 = vadd.f32 %v777_v45, %v259_v33  ;;  %v421_v48 = vadd.f32 %v405_v35, %v389_v34  ;;  %v437_v49 = vmul.f32 %v405_v35, %v405_v35  ;;  %v226_v4 = vadd.f32 %v225_v55, %v768_v40 }
  0xb4   :  { %v393_v50 = vadd.f32 %v377_v38, %v361_v36  ;;  %v409_v51 = vmul.f32 %v377_v38, %v377_v38  ;;  %v360_v53 = vadd.f32 %v547_v30, %v344_v39  ;;  %v376_v60 = vmul.f32 %v344_v39, %v344_v39 }
  0xb5   :  { %v549_v52 = vpop.eup %548  ;;  %550 = vpow2.f32 %v312_v41  ;;  %v294_v54 = vmin.f32 %v278_v46, 0.0  ;;  %v453_v56 = vadd.f32 %v437_v49, %v421_v48  ;;  %v298_v63 = vmin.f32 %v282_v47, 0.0 }
  0xb6   :  { %v425_v37 = vadd.f32 %v409_v51, %v393_v50  ;;  %v441_v57 = vmul.f32 %v409_v51, %v409_v51  ;;  %v334_v58 = vmul.f32 %v549_v52, %v549_v52  ;;  %v392_v59 = vadd.f32 %v376_v60, %v360_v53 }
  0xb7   :  { %v408_v61 = vmul.f32 %v376_v60, %v376_v60  ;;  %v320_v62 = vmul.f32 1.442695, %v294_v54  ;;  %469 = vst [vmem:[#allocation5 + $0x48] sm:$0xff] %v453_v56  ;;  %v328_v9 = vmul.f32 1.442695, %v298_v63  ;;  %v271_v13 = vadd.f32 %v777_v45, %v226_v4 }
  0xb8   :  { %v457_v1 = vadd.f32 %v441_v57, %v425_v37  ;;  %v350_v2 = vadd.f32 %v549_v52, %v334_v58  ;;  %v366_v3 = vmul.f32 %v334_v58, %v334_v58  ;;  %v238_v14 = vadd.f32 %v237_v0, %v770_v43 }
  0xb9   :  { %v424_v7 = vadd.f32 %v408_v61, %v392_v59  ;;  %v440_v8 = vmul.f32 %v408_v61, %v408_v61  ;;  %552 = vpow2.f32 %v320_v62  ;;  %v250_v17 = vadd.f32 %v249_v5, %v790_v42 }
  0xba   :  { %473 = vst [vmem:[#allocation5 + $0x68] sm:$0xff] %v457_v1  ;;  %v382_v10 = vadd.f32 %v366_v3, %v350_v2  ;;  %v398_v11 = vmul.f32 %v366_v3, %v366_v3  ;;  %554 = vpow2.f32 %v328_v9  ;;  %v262_v40 = vadd.f32 %v261_v6, %v148_v12 }
  0xbb   :  { %v551_v15 = vpop.eup %550  ;;  %v456_v16 = vadd.f32 %v440_v8, %v424_v7  ;;  %v287_v21 = vmin.f32 %v271_v13, 0.0  ;;  %v275_v22 = vadd.f32 %v777_v45, %v238_v14  ;;  %v279_v23 = vadd.f32 %v777_v45, %v250_v17 }
  0xbc   :  { %v414_v18 = vadd.f32 %v398_v11, %v382_v10  ;;  %v430_v19 = vmul.f32 %v398_v11, %v398_v11  ;;  %v338_v20 = vmul.f32 %v551_v15, %v551_v15  ;;  %v283_v24 = vadd.f32 %v777_v45, %v262_v40 }
  0xbd   :  { %472 = vst [vmem:[#allocation5 + $0x60] sm:$0xff] %v456_v16  ;;  %v306_v27 = vmul.f32 1.442695, %v287_v21  ;;  %v291_v29 = vmin.f32 %v275_v22, 0.0  ;;  %v295_v30 = vmin.f32 %v279_v23, 0.0 }
  0xbe   :  { %v446_v25 = vadd.f32 %v430_v19, %v414_v18  ;;  %v354_v26 = vadd.f32 %v551_v15, %v338_v20  ;;  %v370_v43 = vmul.f32 %v338_v20, %v338_v20  ;;  %v299_v42 = vmin.f32 %v283_v24, 0.0 }
  0xbf   :  { %v553_v28 = vpop.eup %552  ;;  %556 = vpow2.f32 %v306_v27  ;;  %v314_v34 = vmul.f32 1.442695, %v291_v29  ;;  %v322_v35 = vmul.f32 1.442695, %v295_v30 }
  0xc0   :  { %462 = vst [vmem:[#allocation5 + $0x10] sm:$0xff] %v446_v25  ;;  %v386_v44 = vadd.f32 %v370_v43, %v354_v26  ;;  %v402_v31 = vmul.f32 %v370_v43, %v370_v43  ;;  %v342_v32 = vmul.f32 %v553_v28, %v553_v28  ;;  %v555_v33 = vpop.eup %554  ;;  %v330_v36 = vmul.f32 1.442695, %v299_v42 }
  0xc1   :  { %v346_v46 = vmul.f32 %v555_v33, %v555_v33  ;;  %558 = vpow2.f32 %v314_v34 }
  0xc2   :  { %v418_v38 = vadd.f32 %v402_v31, %v386_v44  ;;  %v434_v39 = vmul.f32 %v402_v31, %v402_v31  ;;  %v358_v45 = vadd.f32 %v553_v28, %v342_v32  ;;  %v374_v41 = vmul.f32 %v342_v32, %v342_v32 }
  0xc3   :  { %560 = vpow2.f32 %v322_v35  ;;  %v362_v50 = vadd.f32 %v555_v33, %v346_v46  ;;  %v378_v51 = vmul.f32 %v346_v46, %v346_v46 }
  0xc4   :  { %v450_v47 = vadd.f32 %v434_v39, %v418_v38  ;;  %v390_v48 = vadd.f32 %v374_v41, %v358_v45  ;;  %v406_v49 = vmul.f32 %v374_v41, %v374_v41  ;;  %562 = vpow2.f32 %v330_v36 }
  0xc5   :  { %v557_v52 = vpop.eup %556  ;;  %v394_v54 = vadd.f32 %v378_v51, %v362_v50  ;;  %v410_v55 = vmul.f32 %v378_v51, %v378_v51 }
  0xc6   :  { %466 = vst [vmem:[#allocation5 + $0x30] sm:$0xff] %v450_v47  ;;  %v422_v53 = vadd.f32 %v406_v49, %v390_v48  ;;  %v438_v60 = vmul.f32 %v406_v49, %v406_v49  ;;  %v335_v56 = vmul.f32 %v557_v52, %v557_v52 }
  0xc7   :  { %v559_v57 = vpop.eup %558  ;;  %v426_v58 = vadd.f32 %v410_v55, %v394_v54  ;;  %v442_v59 = vmul.f32 %v410_v55, %v410_v55 }
  0xc8   :  { %v454_v37 = vadd.f32 %v438_v60, %v422_v53  ;;  %v351_v61 = vadd.f32 %v557_v52, %v335_v56  ;;  %v367_v62 = vmul.f32 %v335_v56, %v335_v56  ;;  %v339_v0 = vmul.f32 %v559_v57, %v559_v57 }
  0xc9   :  { %v561_v63 = vpop.eup %560  ;;  %v458_v2 = vadd.f32 %v442_v59, %v426_v58 }
  0xca   :  { %470 = vst [vmem:[#allocation5 + $0x50] sm:$0xff] %v454_v37  ;;  %v563_v1 = vpop.eup %562  ;;  %v383_v3 = vadd.f32 %v367_v62, %v351_v61  ;;  %v399_v4 = vmul.f32 %v367_v62, %v367_v62  ;;  %v343_v5 = vmul.f32 %v561_v63, %v561_v63  ;;  %v355_v6 = vadd.f32 %v559_v57, %v339_v0 }
  0xcb   :  { %v371_v7 = vmul.f32 %v339_v0, %v339_v0  ;;  %v347_v8 = vmul.f32 %v563_v1, %v563_v1  ;;  %474 = vst [vmem:[#allocation5 + $0x70] sm:$0xff] %v458_v2 }
  0xcc   :  { %v415_v9 = vadd.f32 %v399_v4, %v383_v3  ;;  %v431_v10 = vmul.f32 %v399_v4, %v399_v4  ;;  %v359_v11 = vadd.f32 %v561_v63, %v343_v5  ;;  %v375_v12 = vmul.f32 %v343_v5, %v343_v5 }
  0xcd   :  { %v387_v13 = vadd.f32 %v371_v7, %v355_v6  ;;  %v403_v14 = vmul.f32 %v371_v7, %v371_v7  ;;  %v363_v15 = vadd.f32 %v563_v1, %v347_v8  ;;  %v379_v16 = vmul.f32 %v347_v8, %v347_v8 }
  0xce   :  { %v447_v17 = vadd.f32 %v431_v10, %v415_v9  ;;  %v391_v40 = vadd.f32 %v375_v12, %v359_v11  ;;  %v407_v18 = vmul.f32 %v375_v12, %v375_v12 }
  0xcf   :  { %v419_v19 = vadd.f32 %v403_v14, %v387_v13  ;;  %v435_v20 = vmul.f32 %v403_v14, %v403_v14  ;;  %v395_v21 = vadd.f32 %v379_v16, %v363_v15  ;;  %v411_v22 = vmul.f32 %v379_v16, %v379_v16 }
  0xd0   :  { %463 = vst [vmem:[#allocation5 + $0x18] sm:$0xff] %v447_v17  ;;  %v423_v23 = vadd.f32 %v407_v18, %v391_v40  ;;  %v439_v24 = vmul.f32 %v407_v18, %v407_v18 }
  0xd1   :  { %v451_v25 = vadd.f32 %v435_v20, %v419_v19  ;;  %v427_v26 = vadd.f32 %v411_v22, %v395_v21  ;;  %v443_v43 = vmul.f32 %v411_v22, %v411_v22 }
  0xd2   :  { %v455_v27 = vadd.f32 %v439_v24, %v423_v23 }
  0xd3   :  { %467 = vst [vmem:[#allocation5 + $0x38] sm:$0xff] %v451_v25  ;;  %v459_v28 = vadd.f32 %v443_v43, %v427_v26 }
  0xd4   :  { %471 = vst [vmem:[#allocation5 + $0x58] sm:$0xff] %v455_v27 }
  0xd5   :  { %475 = vst [vmem:[#allocation5 + $0x78] sm:$0xff] %v459_v28 }
  0xd6   :  { %479 = vsyncadd [#allocation3], 1792  ;;  %s482_s14 = sshll.u32 %s813_s5, 4  ;;  %s606_s15 = smov [#allocation5]   ;;  %s483_s14 = int_to_ptr.hbm [resolvable:$true] %s482_s14 }
  0xd7   :  { %s480_s16 = sshll.u32 %s606_s15, 4  ;;  %s607_s17 = smov 128   ;;  %s481_s16 = int_to_ptr.vmem [resolvable:$true] %s480_s16 }
  0xd8   :  { %s608_s18 = smov 8  }
  0xd9   :  { %488 = dma.vmem_to_hbm [thread:$0]  %s481_s16, 256, %s483_s14, [#allocation3], %s607_s17, %s607_s17, %s608_s18  }
  0xda   :  { %602 = dma.done.wait [#allocation3], 2048  }
  0xdb   :  { %603 = vsyncadd [#allocation3], 4294965248 }
  0xdc   :  { %493 = vsyncpa [#allocation3], 1 }
  0xdd   :  { %494 = vsyncpa [#allocation4], 1 }

</bundles_post_ra>
